<compile_context>
chip_gen: v5e
topology: v5e:2x2
jax: 0.10.0
libtpu: 0.0.40
codegen_flags: <defaults>
</compile_context>

<pallas_src>
from functools import partial

import jax
import jax.numpy as jnp
from jax.experimental import pallas as pl
from jax.experimental.pallas import tpu as pltpu

_LANES = 128
_SUBLANES = 8


def _lr_kernel(a_ref, c_ref, d_ref, t_ref, x_ref, o_ref):
    # a_ref, c_ref: (1,) f32 in SMEM; d_ref, t_ref: (10,) f32 in SMEM.
    # x_ref / o_ref: (block_rows, 128) f32 lane-dense slabs in VMEM.
    x = x_ref[...]
    acc = c_ref[0] + a_ref[0] * x
    # Unrolled 10-term |x - t| accumulation — pure VPU work (sub, abs, mul, add).
    for j in range(10):
        acc = acc + d_ref[j] * jnp.abs(x - t_ref[j])
    o_ref[...] = acc


def _choose_blocks(rows_needed, max_block_rows, min_blocks):
    """Pick (block_rows, num_blocks, padded_rows) with:
       - block_rows a multiple of 8 and <= ~max_block_rows (VMEM cap),
       - num_blocks >= min_blocks when there is enough work (v7x 2-TC sharding),
       - padded_rows = num_blocks * block_rows with minimal over-pad
         (pad granularity is effectively one 8-row group)."""
    groups = max(1, pl.cdiv(rows_needed, _SUBLANES))          # 8-row groups
    max_block_groups = max(1, max_block_rows // _SUBLANES)
    num_blocks = max(pl.cdiv(groups, max_block_groups), min(min_blocks, groups))
    block_groups = pl.cdiv(groups, num_blocks)
    num_blocks = pl.cdiv(groups, block_groups)                # re-tighten
    block_rows = block_groups * _SUBLANES
    padded_rows = num_blocks * block_rows
    return block_rows, num_blocks, padded_rows


@partial(jax.jit, static_argnames=("max_block_rows", "min_blocks"))
def lr_forward(x, w1, b1, w2, b2, *, max_block_rows=4096, min_blocks=4):
    """x: (N, 1) f32. w1, b1, w2: (10,) f32, b2: (1,) f32. Returns (N, 1) f32."""
    n = x.shape[0]

    # ---- wrapper precompute: out = C + A*x + sum_j d_j * |x - t_j| ----------
    # relu(w1*x + b1) = 0.5*(w1*x + b1) + 0.5*|w1|*|x - t|, t = -b1/w1 (w1 != 0)
    nonzero = w1 != 0.0
    w1_safe = jnp.where(nonzero, w1, 1.0)
    t = jnp.where(nonzero, -b1 / w1_safe, 0.0).astype(jnp.float32)
    d = jnp.where(nonzero, 0.5 * jnp.abs(w1) * w2, 0.0).astype(jnp.float32)
    a = jnp.sum(jnp.where(nonzero, 0.5 * w1 * w2, 0.0)).astype(jnp.float32).reshape(1)
    c = (b2[0] + jnp.sum(jnp.where(nonzero, 0.5 * w2 * b1,
                                   w2 * jnp.maximum(b1, 0.0)))
         ).astype(jnp.float32).reshape(1)

    # ---- lane-dense packing ---------------------------------------------------
    rows_needed = max(1, pl.cdiv(n, _LANES))
    block_rows, num_blocks, padded_rows = _choose_blocks(
        rows_needed, max_block_rows, min_blocks)
    padded = padded_rows * _LANES

    if padded == n:
        # Aligned fast path: contiguous reshape, no pad/scatter, no output slice.
        x_slab = x.reshape(padded_rows, _LANES)
    else:
        x_slab = jnp.pad(jnp.ravel(x).astype(jnp.float32),
                         (0, padded - n)).reshape(padded_rows, _LANES)

    out_pad = pl.pallas_call(
        _lr_kernel,
        out_shape=jax.ShapeDtypeStruct((padded_rows, _LANES), jnp.float32),
        grid=(num_blocks,),
        in_specs=[
            pl.BlockSpec(memory_space=pltpu.MemorySpace.SMEM),    # A (1,)
            pl.BlockSpec(memory_space=pltpu.MemorySpace.SMEM),    # C (1,)
            pl.BlockSpec(memory_space=pltpu.MemorySpace.SMEM),    # d (10,)
            pl.BlockSpec(memory_space=pltpu.MemorySpace.SMEM),    # t (10,)
            pl.BlockSpec((block_rows, _LANES), lambda i: (i, 0)),  # x slab
        ],
        out_specs=pl.BlockSpec((block_rows, _LANES), lambda i: (i, 0)),
        compiler_params=pltpu.CompilerParams(
            dimension_semantics=("parallel",)),
    )(a, c, d, t, x_slab)

    if padded == n:
        return out_pad.reshape(n, 1)
    return out_pad.reshape(-1)[:n].reshape(n, 1)


def init_params(key):
    """Deterministic init matching nn.Linear defaults.
       hidden1: weight (10,1) -> stored flat (10,), bias (10,)
       hidden2: weight (1,10) -> stored flat (10,), bias (1,)"""
    k1, k2, k3, k4 = jax.random.split(key, 4)
    bound1 = 1.0 / jnp.sqrt(1.0)    # fan_in = 1
    bound2 = 1.0 / jnp.sqrt(10.0)   # fan_in = 10
    w1 = jax.random.uniform(k1, (10,), jnp.float32, -bound1, bound1)
    b1 = jax.random.uniform(k2, (10,), jnp.float32, -bound1, bound1)
    w2 = jax.random.uniform(k3, (10,), jnp.float32, -bound2, bound2)
    b2 = jax.random.uniform(k4, (1,), jnp.float32, -bound2, bound2)
    return w1, b1, w2, b2


def _reference(x, w1, b1, w2, b2):
    h = jnp.maximum(x @ w1.reshape(1, 10) + b1.reshape(1, 10), 0.0)
    return h @ w2.reshape(10, 1) + b2.reshape(1, 1)


if __name__ == "__main__":
    key = jax.random.PRNGKey(0)
    k_param, k_x1, k_x2, k_x3 = jax.random.split(key, 4)
    w1, b1, w2, b2 = init_params(k_param)

    # Small case matching the original module usage (padded path, 1 block).
    N = 8
    x = jax.random.normal(k_x1, (N, 1), jnp.float32)
    out = jax.block_until_ready(lr_forward(x, w1, b1, w2, b2))
    ref = _reference(x, w1, b1, w2, b2)
    assert out.shape == (N, 1)
    assert jnp.allclose(out, ref, atol=2e-5, rtol=1e-5)

    # Non-aligned batch with forced-small blocks: exercises multi-block grid,
    # partial-tail padding and the output slice path.
    N2 = 3000
    x2 = jax.random.normal(k_x2, (N2, 1), jnp.float32)
    out2 = jax.block_until_ready(
        lr_forward(x2, w1, b1, w2, b2, max_block_rows=8))
    ref2 = _reference(x2, w1, b1, w2, b2)
    assert out2.shape == (N2, 1)
    assert jnp.allclose(out2, ref2, atol=2e-5, rtol=1e-5)

    # 1024-aligned batch: exercises the no-pad fast path and a >=2-block grid.
    N3 = 2048
    x3 = jax.random.normal(k_x3, (N3, 1), jnp.float32)
    out3 = jax.block_until_ready(lr_forward(x3, w1, b1, w2, b2))
    ref3 = _reference(x3, w1, b1, w2, b2)
    assert out3.shape == (N3, 1)
    assert jnp.allclose(out3, ref3, atol=2e-5, rtol=1e-5)

    print("KERNEL_OK")
</pallas_src>

<mosaic_0001>
module attributes {stable_mosaic.version = 11 : i64} {
  func.func @_lr_kernel(%arg0: i32, %arg1: memref<1xf32, #tpu.memory_space<smem>>, %arg2: memref<1xf32, #tpu.memory_space<smem>>, %arg3: memref<10xf32, #tpu.memory_space<smem>>, %arg4: memref<10xf32, #tpu.memory_space<smem>>, %arg5: memref<8x128xf32, #tpu.memory_space<vmem>>, %arg6: memref<8x128xf32, #tpu.memory_space<vmem>>) attributes {dimension_semantics = [#tpu.dimension_semantics<parallel>], iteration_bounds = array<i64: 1>, scalar_prefetch = 0 : i64, scratch_operands = 0 : i64, tpu.core_type = #tpu.core_type<tc>, window_params = [{transform_indices = @transform_0, window_bounds = array<i64: 1>}, {transform_indices = @transform_1, window_bounds = array<i64: 1>}, {transform_indices = @transform_2, window_bounds = array<i64: 10>}, {transform_indices = @transform_3, window_bounds = array<i64: 10>}, {transform_indices = @transform_4, window_bounds = array<i64: 8, 128>}, {transform_indices = @transform_5, window_bounds = array<i64: 8, 128>}]} {
    %c0 = arith.constant 0 : index
    %c0_0 = arith.constant 0 : index
    %0 = vector.load %arg5[%c0, %c0_0] : memref<8x128xf32, #tpu.memory_space<vmem>>, vector<8x128xf32>
    %c0_1 = arith.constant 0 : index
    %1 = memref.load %arg2[%c0_1] : memref<1xf32, #tpu.memory_space<smem>>
    %c0_2 = arith.constant 0 : index
    %2 = memref.load %arg1[%c0_2] : memref<1xf32, #tpu.memory_space<smem>>
    %3 = vector.broadcast %2 : f32 to vector<8x128xf32>
    %4 = arith.mulf %3, %0 : vector<8x128xf32>
    %5 = vector.broadcast %1 : f32 to vector<8x128xf32>
    %6 = arith.addf %5, %4 : vector<8x128xf32>
    %c0_3 = arith.constant 0 : index
    %7 = memref.load %arg3[%c0_3] : memref<10xf32, #tpu.memory_space<smem>>
    %c0_4 = arith.constant 0 : index
    %8 = memref.load %arg4[%c0_4] : memref<10xf32, #tpu.memory_space<smem>>
    %9 = vector.broadcast %8 : f32 to vector<8x128xf32>
    %10 = arith.subf %0, %9 : vector<8x128xf32>
    %11 = math.absf %10 : vector<8x128xf32>
    %12 = vector.broadcast %7 : f32 to vector<8x128xf32>
    %13 = arith.mulf %12, %11 : vector<8x128xf32>
    %14 = arith.addf %6, %13 : vector<8x128xf32>
    %c1 = arith.constant 1 : index
    %15 = memref.load %arg3[%c1] : memref<10xf32, #tpu.memory_space<smem>>
    %c1_5 = arith.constant 1 : index
    %16 = memref.load %arg4[%c1_5] : memref<10xf32, #tpu.memory_space<smem>>
    %17 = vector.broadcast %16 : f32 to vector<8x128xf32>
    %18 = arith.subf %0, %17 : vector<8x128xf32>
    %19 = math.absf %18 : vector<8x128xf32>
    %20 = vector.broadcast %15 : f32 to vector<8x128xf32>
    %21 = arith.mulf %20, %19 : vector<8x128xf32>
    %22 = arith.addf %14, %21 : vector<8x128xf32>
    %c2 = arith.constant 2 : index
    %23 = memref.load %arg3[%c2] : memref<10xf32, #tpu.memory_space<smem>>
    %c2_6 = arith.constant 2 : index
    %24 = memref.load %arg4[%c2_6] : memref<10xf32, #tpu.memory_space<smem>>
    %25 = vector.broadcast %24 : f32 to vector<8x128xf32>
    %26 = arith.subf %0, %25 : vector<8x128xf32>
    %27 = math.absf %26 : vector<8x128xf32>
    %28 = vector.broadcast %23 : f32 to vector<8x128xf32>
    %29 = arith.mulf %28, %27 : vector<8x128xf32>
    %30 = arith.addf %22, %29 : vector<8x128xf32>
    %c3 = arith.constant 3 : index
    %31 = memref.load %arg3[%c3] : memref<10xf32, #tpu.memory_space<smem>>
    %c3_7 = arith.constant 3 : index
    %32 = memref.load %arg4[%c3_7] : memref<10xf32, #tpu.memory_space<smem>>
    %33 = vector.broadcast %32 : f32 to vector<8x128xf32>
    %34 = arith.subf %0, %33 : vector<8x128xf32>
    %35 = math.absf %34 : vector<8x128xf32>
    %36 = vector.broadcast %31 : f32 to vector<8x128xf32>
    %37 = arith.mulf %36, %35 : vector<8x128xf32>
    %38 = arith.addf %30, %37 : vector<8x128xf32>
    %c4 = arith.constant 4 : index
    %39 = memref.load %arg3[%c4] : memref<10xf32, #tpu.memory_space<smem>>
    %c4_8 = arith.constant 4 : index
    %40 = memref.load %arg4[%c4_8] : memref<10xf32, #tpu.memory_space<smem>>
    %41 = vector.broadcast %40 : f32 to vector<8x128xf32>
    %42 = arith.subf %0, %41 : vector<8x128xf32>
    %43 = math.absf %42 : vector<8x128xf32>
    %44 = vector.broadcast %39 : f32 to vector<8x128xf32>
    %45 = arith.mulf %44, %43 : vector<8x128xf32>
    %46 = arith.addf %38, %45 : vector<8x128xf32>
    %c5 = arith.constant 5 : index
    %47 = memref.load %arg3[%c5] : memref<10xf32, #tpu.memory_space<smem>>
    %c5_9 = arith.constant 5 : index
    %48 = memref.load %arg4[%c5_9] : memref<10xf32, #tpu.memory_space<smem>>
    %49 = vector.broadcast %48 : f32 to vector<8x128xf32>
    %50 = arith.subf %0, %49 : vector<8x128xf32>
    %51 = math.absf %50 : vector<8x128xf32>
    %52 = vector.broadcast %47 : f32 to vector<8x128xf32>
    %53 = arith.mulf %52, %51 : vector<8x128xf32>
    %54 = arith.addf %46, %53 : vector<8x128xf32>
    %c6 = arith.constant 6 : index
    %55 = memref.load %arg3[%c6] : memref<10xf32, #tpu.memory_space<smem>>
    %c6_10 = arith.constant 6 : index
    %56 = memref.load %arg4[%c6_10] : memref<10xf32, #tpu.memory_space<smem>>
    %57 = vector.broadcast %56 : f32 to vector<8x128xf32>
    %58 = arith.subf %0, %57 : vector<8x128xf32>
    %59 = math.absf %58 : vector<8x128xf32>
    %60 = vector.broadcast %55 : f32 to vector<8x128xf32>
    %61 = arith.mulf %60, %59 : vector<8x128xf32>
    %62 = arith.addf %54, %61 : vector<8x128xf32>
    %c7 = arith.constant 7 : index
    %63 = memref.load %arg3[%c7] : memref<10xf32, #tpu.memory_space<smem>>
    %c7_11 = arith.constant 7 : index
    %64 = memref.load %arg4[%c7_11] : memref<10xf32, #tpu.memory_space<smem>>
    %65 = vector.broadcast %64 : f32 to vector<8x128xf32>
    %66 = arith.subf %0, %65 : vector<8x128xf32>
    %67 = math.absf %66 : vector<8x128xf32>
    %68 = vector.broadcast %63 : f32 to vector<8x128xf32>
    %69 = arith.mulf %68, %67 : vector<8x128xf32>
    %70 = arith.addf %62, %69 : vector<8x128xf32>
    %c8 = arith.constant 8 : index
    %71 = memref.load %arg3[%c8] : memref<10xf32, #tpu.memory_space<smem>>
    %c8_12 = arith.constant 8 : index
    %72 = memref.load %arg4[%c8_12] : memref<10xf32, #tpu.memory_space<smem>>
    %73 = vector.broadcast %72 : f32 to vector<8x128xf32>
    %74 = arith.subf %0, %73 : vector<8x128xf32>
    %75 = math.absf %74 : vector<8x128xf32>
    %76 = vector.broadcast %71 : f32 to vector<8x128xf32>
    %77 = arith.mulf %76, %75 : vector<8x128xf32>
    %78 = arith.addf %70, %77 : vector<8x128xf32>
    %c9 = arith.constant 9 : index
    %79 = memref.load %arg3[%c9] : memref<10xf32, #tpu.memory_space<smem>>
    %c9_13 = arith.constant 9 : index
    %80 = memref.load %arg4[%c9_13] : memref<10xf32, #tpu.memory_space<smem>>
    %81 = vector.broadcast %80 : f32 to vector<8x128xf32>
    %82 = arith.subf %0, %81 : vector<8x128xf32>
    %83 = math.absf %82 : vector<8x128xf32>
    %84 = vector.broadcast %79 : f32 to vector<8x128xf32>
    %85 = arith.mulf %84, %83 : vector<8x128xf32>
    %86 = arith.addf %78, %85 : vector<8x128xf32>
    %c0_14 = arith.constant 0 : index
    %c0_15 = arith.constant 0 : index
    %87 = vector.load %arg6[%c0_14, %c0_15] : memref<8x128xf32, #tpu.memory_space<vmem>>, vector<8x128xf32>
    tpu.vector_store %arg6[%c0_14, %c0_15], %86 {strides = array<i32>} : memref<8x128xf32, #tpu.memory_space<vmem>>, vector<8x128xf32>,
    return
  }
  func.func @transform_0(%arg0: i32) -> i32 {
    %c0_i32 = arith.constant 0 : i32
    %c0_i32_0 = arith.constant 0 : i32
    return %c0_i32 : i32
  }
  func.func @transform_1(%arg0: i32) -> i32 {
    %c0_i32 = arith.constant 0 : i32
    %c0_i32_0 = arith.constant 0 : i32
    return %c0_i32 : i32
  }
  func.func @transform_2(%arg0: i32) -> i32 {
    %c0_i32 = arith.constant 0 : i32
    %c0_i32_0 = arith.constant 0 : i32
    return %c0_i32 : i32
  }
  func.func @transform_3(%arg0: i32) -> i32 {
    %c0_i32 = arith.constant 0 : i32
    %c0_i32_0 = arith.constant 0 : i32
    return %c0_i32 : i32
  }
  func.func @transform_4(%arg0: i32) -> (i32, i32) {
    %c0_i32 = arith.constant 0 : i32
    %c0_i32_0 = arith.constant 0 : i32
    return %arg0, %c0_i32 : i32, i32
  }
  func.func @transform_5(%arg0: i32) -> (i32, i32) {
    %c0_i32 = arith.constant 0 : i32
    %c0_i32_0 = arith.constant 0 : i32
    return %arg0, %c0_i32 : i32, i32
  }
}

</mosaic_0001>

<bundles_post_ra>
// kernel: lr_forward.1
= control target key start
LH: loop header
LB: loop body
LE: loop exit
PB: predicated region body
PF: predicated region fallthrough
CT: control target
= control target key end

     0   :  { %12 = vsyncpa [#allocation5], 0  ;;  %s279_s0 = inlined_call_operand.<no memory space> [shape: f32[1], index: 0, kind: input, shape index: {}]   ;;  %s280_s1 = inlined_call_operand.<no memory space> [shape: f32[1], index: 1, kind: input, shape index: {}]   ;;  %s281_s2 = inlined_call_operand.vmem [shape: f32[10], index: 2, kind: input, shape index: {}]   ;;  %s282_s3 = inlined_call_operand.vmem [shape: f32[10], index: 3, kind: input, shape index: {}]   ;;  %s283_s4 = inlined_call_operand.vmem [shape: f32[8,128], index: 4, kind: input, shape index: {}]   ;;  %s284_s5 = inlined_call_operand.vmem [shape: f32[8,128], index: 5, kind: output, shape index: {}]  }
   0x1   :  { %s23_s20 = sshll.u32 %s281_s2, 4  ;;  %s24_s20 = int_to_ptr.vmem [resolvable:$true] %s23_s20 }
   0x2   :  { %13 = vsyncpa [#allocation7], 0  ;;  %s32_s23 = sshll.u32 %s282_s3, 4  ;;  %s189_s24 = smov [#allocation4]   ;;  %s33_s23 = int_to_ptr.vmem [resolvable:$true] %s32_s23 }
   0x3   :  { %26 = dma.vmem_to_smem %s24_s20, 16, %s189_s24, [#allocation5]  }
   0x4   :  { %s190_s25 = smov [#allocation6]  }
   0x5   :  { %35 = dma.vmem_to_smem %s33_s23, 16, %s190_s25, [#allocation7]  }
   0x6   :  { %185 = dma.done.wait [#allocation5], 16  }
   0x7   :  { %186 = vsyncadd [#allocation5], 4294967280 }
   0x8   :  { %187 = dma.done.wait [#allocation7], 16  }
   0x9   :  { %188 = vsyncadd [#allocation7], 4294967280 }
   0xa   :  { %46 = sfence }
   0xb   :  { %s54_s26 = sld [smem:[#allocation4]]  ;;  %v50_v0 = vstv %s279_s0  ;;  %v237_v1 = vld [vmem:[%s283_s4] sm:$0xff]  ;;  %v52_v3 = vstv %s280_s1 }
   0xc   :  { %s55_s27 = sld [smem:[#allocation6]]  ;;  %v51_v2 = vmul.f32 %v50_v0, %v237_v1 }
   0xd   :  { %s227_s28 = sld [smem:[#allocation4 + $0x1]] }
   0xe   :  { %s142_s30 = sld [smem:[#allocation6 + $0x1]]  ;;  %v53_v8 = vadd.f32 %v52_v3, %v51_v2 }
   0xf   :  { %s232_s3 = sld [smem:[#allocation4 + $0x2]] }
  0x10   :  { %s144_s8 = sld [smem:[#allocation6 + $0x2]] }
  0x11   :  { %s240_s9 = sld [smem:[#allocation4 + $0x3]]  ;;  %v59_v6 = vstv %s54_s26 }
  0x12   :  { %v56_v4 = vstv %s55_s27  ;;  %s146_s0 = sld [smem:[#allocation6 + $0x3]] }
  0x13   :  { %v57_v5 = vsub.f32 %v237_v1, %v56_v4  ;;  %s246_s12 = sld [smem:[#allocation4 + $0x4]]  ;;  %v67_v11 = vstv %s227_s28 }
  0x14   :  { %v64_v7 = vstv %s142_s30  ;;  %s148_s4 = sld [smem:[#allocation6 + $0x4]] }
  0x15   :  { %v58_v9 = vand.u32 2147483647, %v57_v5  ;;  %v65_v10 = vsub.f32 %v237_v1, %v64_v7  ;;  %s249_s13 = sld [smem:[#allocation4 + $0x5]]  ;;  %v75_v16 = vstv %s232_s3 }
  0x16   :  { %v72_v12 = vstv %s144_s8  ;;  %s150_s1 = sld [smem:[#allocation6 + $0x5]] }
  0x17   :  { %v60_v13 = vmul.f32 %v59_v6, %v58_v9  ;;  %v66_v14 = vand.u32 2147483647, %v65_v10  ;;  %v73_v15 = vsub.f32 %v237_v1, %v72_v12  ;;  %s253_s14 = sld [smem:[#allocation4 + $0x6]]  ;;  %v83_v22 = vstv %s240_s9 }
  0x18   :  { %v80_v17 = vstv %s146_s0  ;;  %s152_s15 = sld [smem:[#allocation6 + $0x6]] }
  0x19   :  { %v61_v18 = vadd.f32 %v60_v13, %v53_v8  ;;  %v68_v19 = vmul.f32 %v67_v11, %v66_v14  ;;  %v74_v20 = vand.u32 2147483647, %v73_v15  ;;  %v81_v21 = vsub.f32 %v237_v1, %v80_v17  ;;  %s257_s16 = sld [smem:[#allocation4 + $0x7]] }
  0x1a   :  { %v88_v23 = vstv %s148_s4  ;;  %s154_s17 = sld [smem:[#allocation6 + $0x7]]  ;;  %v91_v28 = vstv %s246_s12 }
  0x1b   :  { %v69_v24 = vadd.f32 %v68_v19, %v61_v18  ;;  %v76_v25 = vmul.f32 %v75_v16, %v74_v20  ;;  %v82_v26 = vand.u32 2147483647, %v81_v21  ;;  %v89_v27 = vsub.f32 %v237_v1, %v88_v23  ;;  %s261_s18 = sld [smem:[#allocation4 + $0x8]] }
  0x1c   :  { %v96_v29 = vstv %s150_s1  ;;  %s156_s19 = sld [smem:[#allocation6 + $0x8]]  ;;  %v99_v34 = vstv %s249_s13 }
  0x1d   :  { %v77_v30 = vadd.f32 %v76_v25, %v69_v24  ;;  %v84_v31 = vmul.f32 %v83_v22, %v82_v26  ;;  %v90_v32 = vand.u32 2147483647, %v89_v27  ;;  %v97_v33 = vsub.f32 %v237_v1, %v96_v29  ;;  %s265_s20 = sld [smem:[#allocation4 + $0x9]] }
  0x1e   :  { %v104_v35 = vstv %s152_s15  ;;  %s158_s21 = sld [smem:[#allocation6 + $0x9]]  ;;  %v107_v40 = vstv %s253_s14 }
  0x1f   :  { %v85_v36 = vadd.f32 %v84_v31, %v77_v30  ;;  %v92_v37 = vmul.f32 %v91_v28, %v90_v32  ;;  %v98_v38 = vand.u32 2147483647, %v97_v33  ;;  %v105_v39 = vsub.f32 %v237_v1, %v104_v35 }
  0x20   :  { %v112_v41 = vstv %s154_s17  ;;  %v115_v46 = vstv %s257_s16 }
  0x21   :  { %v93_v42 = vadd.f32 %v92_v37, %v85_v36  ;;  %v100_v43 = vmul.f32 %v99_v34, %v98_v38  ;;  %v106_v44 = vand.u32 2147483647, %v105_v39  ;;  %v113_v45 = vsub.f32 %v237_v1, %v112_v41 }
  0x22   :  { %v120_v47 = vstv %s156_s19  ;;  %v123_v52 = vstv %s261_s18 }
  0x23   :  { %v101_v48 = vadd.f32 %v100_v43, %v93_v42  ;;  %v108_v49 = vmul.f32 %v107_v40, %v106_v44  ;;  %v114_v50 = vand.u32 2147483647, %v113_v45  ;;  %v121_v51 = vsub.f32 %v237_v1, %v120_v47 }
  0x24   :  { %v128_v53 = vstv %s158_s21  ;;  %v131_v58 = vstv %s265_s20 }
  0x25   :  { %v109_v54 = vadd.f32 %v108_v49, %v101_v48  ;;  %v116_v55 = vmul.f32 %v115_v46, %v114_v50  ;;  %v122_v56 = vand.u32 2147483647, %v121_v51  ;;  %v129_v57 = vsub.f32 %v237_v1, %v128_v53 }
  0x27   :  { %v117_v59 = vadd.f32 %v116_v55, %v109_v54  ;;  %v124_v60 = vmul.f32 %v123_v52, %v122_v56  ;;  %v130_v61 = vand.u32 2147483647, %v129_v57 }
  0x29   :  { %v125_v62 = vadd.f32 %v124_v60, %v117_v59  ;;  %v132_v63 = vmul.f32 %v131_v58, %v130_v61 }
  0x2b   :  { %v133_v0 = vadd.f32 %v132_v63, %v125_v62 }
  0x2d   :  { %134 = vst [vmem:[%s284_s5] sm:$0xff] %v133_v0 }
  0x2e   :  { %139 = vsyncpa [#allocation5], 1 }
  0x2f   :  { %140 = vsyncpa [#allocation7], 1 }

</bundles_post_ra>
